<compile_context>
chip_gen: v5e
topology: v5e:2x2
jax: 0.10.0
libtpu: 0.0.40
codegen_flags: <defaults>
</compile_context>

<pallas_src>
import functools

import jax
import jax.numpy as jnp
from jax import lax
from jax.experimental import pallas as pl
from jax.experimental.pallas import tpu as pltpu

BN_EPS = 1e-5


def upblock_kernel(y_ref, gamma_ref, beta_ref, avg_ref, w1_ref, b1_ref,
                   w2_ref, b2_ref, mtop_ref, mbot_ref, out_ref):
    """Fused BN (batch stats) + 2x (3x3 'same' conv + ReLU), lane-dense layout.

    y_ref:     (N*H, W*Cin)        f32   input rows; lane index = w*Cin + c
    gamma_ref: (1, W*Cin)          f32   BN gamma, pre-tiled along W
    beta_ref:  (1, W*Cin)          f32   BN beta,  pre-tiled along W
    avg_ref:   (W*Cin, W*Cin)      f32   channel-averaging matrix (folds W, re-tiles)
    w1_ref:    (W*Cin, 3*W*Cout)   bf16  banded conv1 weights, bands [dh=0|1|2] along lanes
    b1_ref:    (1, W*Cout)         f32   conv1 bias, pre-tiled along W
    w2_ref:    (W*Cout, 3*W*Cout)  bf16  banded conv2 weights
    b2_ref:    (1, W*Cout)         f32
    mtop_ref:  (N*H, 1)            f32   1.0 where h > 0     (else 0.0)
    mbot_ref:  (N*H, 1)            f32   1.0 where h < H-1   (else 0.0)
    out_ref:   (N*H, W*Cout)       f32   lane-dense output (128 lanes at demo shape)
    """
    NH, _ = y_ref.shape
    WCout = out_ref.shape[-1]

    y = y_ref[...]                                              # (N*H, W*Cin) f32

    # --- BatchNorm2d, training mode, one pass, fused into a single FMA --------
    colmean = jnp.mean(y, axis=0, keepdims=True)                # (1, W*Cin)
    cole2 = jnp.mean(y * y, axis=0, keepdims=True)              # (1, W*Cin)
    # avg folds the per-(w,c) stats to per-channel stats and re-tiles them over W.
    m_t = jnp.dot(colmean, avg_ref[...], preferred_element_type=jnp.float32)
    e2_t = jnp.dot(cole2, avg_ref[...], preferred_element_type=jnp.float32)
    var_t = e2_t - m_t * m_t                                    # biased variance
    scale_t = gamma_ref[...] * lax.rsqrt(var_t + BN_EPS)
    shift_t = beta_ref[...] - m_t * scale_t
    yn = y * scale_t + shift_t                                  # (N*H, W*Cin)

    mtop = mtop_ref[...]                                        # (N*H, 1)
    mbot = mbot_ref[...]                                        # (N*H, 1)
    zrow = jnp.zeros((1, WCout), jnp.float32)

    def conv3x3_relu(lhs_bf16, w_ref, b_ref):
        # One MXU matmul produces all three kernel-row contributions as three
        # 128-aligned lane blocks: m[:, dh*WCout:(dh+1)*WCout] = lhs @ B[dh].
        m = jnp.dot(lhs_bf16, w_ref[...], preferred_element_type=jnp.float32)
        m0 = m[:, 0 * WCout:1 * WCout]          # needs row r-1 at output row r
        m1 = m[:, 1 * WCout:2 * WCout]          # row r
        m2 = m[:, 2 * WCout:3 * WCout]          # needs row r+1
        up = jnp.concatenate([zrow, m0[:NH - 1, :]], axis=0)    # m0 shifted down
        dn = jnp.concatenate([m2[1:, :], zrow], axis=0)         # m2 shifted up
        # Masks zero the rows that fall across an image's top/bottom boundary
        # (implicit 'same' zero padding along H).
        acc = m1 + mtop * up + mbot * dn
        return jnp.maximum(acc + b_ref[...], 0.0)

    h1 = conv3x3_relu(yn.astype(jnp.bfloat16), w1_ref, b1_ref)  # (N*H, W*Cout)
    # Second conv; ReLU -> ReLU (the extra ReLU is identity on non-negatives).
    out_ref[...] = conv3x3_relu(h1.astype(jnp.bfloat16), w2_ref, b2_ref)


def _band_weights(w_hwio, W, dtype=jnp.bfloat16):
    """Block-banded conv-along-W matrices, all three kernel rows concatenated.

    w_hwio: (3, 3, Cin, Cout). Returns (W*Cin, 3*W*Cout) where column block dh
    holds B[dh][wi*Cin + c, wo*Cout + o] = w[dh, wi - wo + 1, c, o] when
    0 <= wi-wo+1 < 3 (zero otherwise), so a row in (w*Cin) lane layout times
    B[dh] is the 'same' conv along W with implicit zero padding at the w edges.
    """
    _, _, Cin, Cout = w_hwio.shape
    wi = jnp.arange(W)[:, None]                  # input w index
    wo = jnp.arange(W)[None, :]                  # output w index
    dw = wi - wo + 1                             # tap index
    valid = ((dw >= 0) & (dw < 3)).astype(jnp.float32)[..., None, None]
    dwc = jnp.clip(dw, 0, 2)
    bands = []
    for dh in range(3):
        blocks = w_hwio[dh][dwc] * valid                      # (W, W, Cin, Cout)
        bands.append(blocks.transpose(0, 2, 1, 3).reshape(W * Cin, W * Cout))
    return jnp.concatenate(bands, axis=1).astype(dtype)       # (W*Cin, 3*W*Cout)


def pixel_shuffle_nchw(x, r):
    """PyTorch nn.PixelShuffle semantics on NCHW input."""
    N, C, H, W = x.shape
    Cout = C // (r * r)
    x = x.reshape(N, Cout, r, r, H, W)
    x = x.transpose(0, 1, 4, 2, 5, 3)
    return x.reshape(N, Cout, H * r, W * r)


@functools.partial(jax.jit, static_argnames=("upscale_factor",))
def upblock_forward(x_nchw, skip_nchw, params, upscale_factor=2):
    """Full UpBlock forward. Inputs/outputs in PyTorch NCHW layout."""
    gamma, beta, w1, b1, w2, b2 = params   # w1: (3,3,Cin,Cout), w2: (3,3,Cout,Cout)

    # Layout glue: pixel shuffle + channel concat + NCHW -> NHWC -> (N*H, W*Cin).
    ps = pixel_shuffle_nchw(x_nchw, upscale_factor)
    y = jnp.concatenate([ps, skip_nchw], axis=1)                # (N, Cin, H, W)
    N, Cin, H, W = y.shape
    Cout = w1.shape[-1]
    y2 = jnp.transpose(y, (0, 2, 3, 1)).astype(jnp.float32).reshape(N * H, W * Cin)

    # Host-side parameter packing (tiny; fused/folded by XLA under jit).
    gamma_t = jnp.tile(gamma.astype(jnp.float32), W).reshape(1, W * Cin)
    beta_t = jnp.tile(beta.astype(jnp.float32), W).reshape(1, W * Cin)
    avg = jnp.tile(jnp.eye(Cin, dtype=jnp.float32), (W, W)) / W  # (W*Cin, W*Cin)
    B1 = _band_weights(w1, W)                                    # (W*Cin, 3*W*Cout) bf16
    B2 = _band_weights(w2, W)                                    # (W*Cout, 3*W*Cout) bf16
    b1_t = jnp.tile(b1.astype(jnp.float32), W).reshape(1, W * Cout)
    b2_t = jnp.tile(b2.astype(jnp.float32), W).reshape(1, W * Cout)

    # Per-row image-boundary masks for the h-direction 'same' padding.
    h_idx = jnp.arange(N * H, dtype=jnp.int32) % H
    mtop = (h_idx > 0).astype(jnp.float32).reshape(N * H, 1)
    mbot = (h_idx < H - 1).astype(jnp.float32).reshape(N * H, 1)

    out2 = pl.pallas_call(
        upblock_kernel,
        out_shape=jax.ShapeDtypeStruct((N * H, W * Cout), jnp.float32),
        in_specs=[pl.BlockSpec(memory_space=pltpu.MemorySpace.VMEM)] * 10,
        out_specs=pl.BlockSpec(memory_space=pltpu.MemorySpace.VMEM),
        # Explicit (modest) scoped-VMEM budget; total live data here is << 1 MiB.
        compiler_params=pltpu.CompilerParams(vmem_limit_bytes=32 * 1024 * 1024),
    )(y2, gamma_t, beta_t, avg, B1, b1_t, B2, b2_t, mtop, mbot)

    out = out2.reshape(N, H, W, Cout)                            # (N,H,W,Cout)
    return jnp.transpose(out, (0, 3, 1, 2))                      # back to NCHW


def upblock_reference(x_nchw, skip_nchw, params, upscale_factor=2,
                      conv_dtype=jnp.float32):
    """Pure-JAX reference mirroring the PyTorch module (training-mode BN).

    conv_dtype=jnp.bfloat16 gives a precision-matched reference (bf16 conv
    operands, f32 accumulation) for a tight numerical check of the kernel.
    """
    gamma, beta, w1, b1, w2, b2 = params
    ps = pixel_shuffle_nchw(x_nchw, upscale_factor)
    y = jnp.concatenate([ps, skip_nchw], axis=1).astype(jnp.float32)

    mean = y.mean(axis=(0, 2, 3), keepdims=True)
    var = ((y - mean) ** 2).mean(axis=(0, 2, 3), keepdims=True)
    yn = (y - mean) / jnp.sqrt(var + BN_EPS)
    yn = yn * gamma.reshape(1, -1, 1, 1) + beta.reshape(1, -1, 1, 1)

    dn = ('NCHW', 'HWIO', 'NCHW')
    h1 = lax.conv_general_dilated(yn.astype(conv_dtype), w1.astype(conv_dtype),
                                  (1, 1), 'SAME', dimension_numbers=dn,
                                  preferred_element_type=jnp.float32)
    h1 = jax.nn.relu(h1 + b1.reshape(1, -1, 1, 1))
    h2 = lax.conv_general_dilated(h1.astype(conv_dtype), w2.astype(conv_dtype),
                                  (1, 1), 'SAME', dimension_numbers=dn,
                                  preferred_element_type=jnp.float32)
    h2 = jax.nn.relu(jax.nn.relu(h2 + b2.reshape(1, -1, 1, 1)))
    return h2


def init_params(key, in_channels, out_channels):
    ks = jax.random.split(key, 6)
    fan1 = 3 * 3 * in_channels
    fan2 = 3 * 3 * out_channels
    gamma = jax.random.uniform(ks[0], (in_channels,), jnp.float32, 0.5, 1.5)
    beta = jax.random.normal(ks[1], (in_channels,), jnp.float32) * 0.1
    w1 = jax.random.normal(ks[2], (3, 3, in_channels, out_channels), jnp.float32) / jnp.sqrt(fan1)
    b1 = jax.random.normal(ks[3], (out_channels,), jnp.float32) * 0.05
    w2 = jax.random.normal(ks[4], (3, 3, out_channels, out_channels), jnp.float32) / jnp.sqrt(fan2)
    b2 = jax.random.normal(ks[5], (out_channels,), jnp.float32) * 0.05
    return (gamma, beta, w1, b1, w2, b2)


if __name__ == "__main__":
    key = jax.random.PRNGKey(0)
    k_x, k_skip, k_params = jax.random.split(key, 3)

    # x: (N=2, C=8, H=8, W=8) NCHW; PixelShuffle(2) -> (2, 2, 16, 16)
    # skip: (2, 2, 16, 16) -> concat channels = 4 = in_channels; out_channels = 8
    upscale_factor = 2
    in_channels, out_channels = 4, 8
    x = jax.random.normal(k_x, (2, 8, 8, 8), jnp.float32)
    skip = jax.random.normal(k_skip, (2, 2, 16, 16), jnp.float32)

    params = init_params(k_params, in_channels, out_channels)

    out = upblock_forward(x, skip, params, upscale_factor=upscale_factor)
    out = jax.block_until_ready(out)
    assert out.shape == (2, out_channels, 16, 16), out.shape

    # Tight check vs a precision-matched reference (bf16 conv operands, f32 acc).
    ref_bf16 = jax.block_until_ready(
        upblock_reference(x, skip, params, upscale_factor, conv_dtype=jnp.bfloat16))
    assert jnp.allclose(out, ref_bf16, rtol=5e-3, atol=5e-3), \
        f"max abs err vs matched-precision ref = {jnp.max(jnp.abs(out - ref_bf16))}"

    # Loose check vs the full-f32 module reference (bf16 MXU operands introduce
    # ~1e-2-level differences relative to pure f32 convs).
    ref_f32 = jax.block_until_ready(
        upblock_reference(x, skip, params, upscale_factor, conv_dtype=jnp.float32))
    assert jnp.allclose(out, ref_f32, rtol=5e-2, atol=5e-2), \
        f"max abs err vs f32 ref = {jnp.max(jnp.abs(out - ref_f32))}"

    print("KERNEL_OK")
</pallas_src>

<mosaic_0001>
module attributes {stable_mosaic.version = 11 : i64} {
  func.func @upblock_kernel(%arg0: memref<32x64xf32, #tpu.memory_space<vmem>>, %arg1: memref<1x64xf32, #tpu.memory_space<vmem>>, %arg2: memref<1x64xf32, #tpu.memory_space<vmem>>, %arg3: memref<64x64xf32, #tpu.memory_space<vmem>>, %arg4: memref<64x384xbf16, #tpu.memory_space<vmem>>, %arg5: memref<1x128xf32, #tpu.memory_space<vmem>>, %arg6: memref<128x384xbf16, #tpu.memory_space<vmem>>, %arg7: memref<1x128xf32, #tpu.memory_space<vmem>>, %arg8: memref<32x1xf32, #tpu.memory_space<vmem>>, %arg9: memref<32x1xf32, #tpu.memory_space<vmem>>, %arg10: memref<32x128xf32, #tpu.memory_space<vmem>>) attributes {dimension_semantics = [], scalar_prefetch = 0 : i64, scratch_operands = 0 : i64, tpu.core_type = #tpu.core_type<tc>} {
    %c0 = arith.constant 0 : index
    %c0_0 = arith.constant 0 : index
    %0 = vector.load %arg0[%c0, %c0_0] : memref<32x64xf32, #tpu.memory_space<vmem>>, vector<32x64xf32>
    %cst = arith.constant dense<0.000000e+00> : vector<64xf32>
    %1 = vector.multi_reduction <add>, %0, %cst [0] : vector<32x64xf32> to vector<64xf32>
    %2 = vector.shape_cast %1 : vector<64xf32> to vector<1x64xf32>
    %cst_1 = arith.constant 3.200000e+01 : f32
    %3 = vector.broadcast %cst_1 : f32 to vector<1x64xf32>
    %4 = arith.divf %2, %3 : vector<1x64xf32>
    %5 = arith.mulf %0, %0 : vector<32x64xf32>
    %cst_2 = arith.constant dense<0.000000e+00> : vector<64xf32>
    %6 = vector.multi_reduction <add>, %5, %cst_2 [0] : vector<32x64xf32> to vector<64xf32>
    %7 = vector.shape_cast %6 : vector<64xf32> to vector<1x64xf32>
    %cst_3 = arith.constant 3.200000e+01 : f32
    %8 = vector.broadcast %cst_3 : f32 to vector<1x64xf32>
    %9 = arith.divf %7, %8 : vector<1x64xf32>
    %c0_4 = arith.constant 0 : index
    %c0_5 = arith.constant 0 : index
    %10 = vector.load %arg3[%c0_4, %c0_5] : memref<64x64xf32, #tpu.memory_space<vmem>>, vector<64x64xf32>
    %cst_6 = arith.constant dense<0.000000e+00> : vector<1x64xf32>
    %11 = tpu.matmul %4, %10, %cst_6 {dimension_numbers = #tpu.dot_dimension_numbers<[1], [0], [0], [1], [0, 0, 1, 1], [], []>} : vector<1x64xf32>, vector<64x64xf32>, vector<1x64xf32> -> vector<1x64xf32>
    %c0_7 = arith.constant 0 : index
    %c0_8 = arith.constant 0 : index
    %12 = vector.load %arg3[%c0_7, %c0_8] : memref<64x64xf32, #tpu.memory_space<vmem>>, vector<64x64xf32>
    %cst_9 = arith.constant dense<0.000000e+00> : vector<1x64xf32>
    %13 = tpu.matmul %9, %12, %cst_9 {dimension_numbers = #tpu.dot_dimension_numbers<[1], [0], [0], [1], [0, 0, 1, 1], [], []>} : vector<1x64xf32>, vector<64x64xf32>, vector<1x64xf32> -> vector<1x64xf32>
    %14 = arith.mulf %11, %11 : vector<1x64xf32>
    %15 = arith.subf %13, %14 : vector<1x64xf32>
    %c0_10 = arith.constant 0 : index
    %c0_11 = arith.constant 0 : index
    %16 = vector.load %arg1[%c0_10, %c0_11] : memref<1x64xf32, #tpu.memory_space<vmem>>, vector<1x64xf32>
    %cst_12 = arith.constant 9.99999974E-6 : f32
    %17 = vector.broadcast %cst_12 : f32 to vector<1x64xf32>
    %18 = arith.addf %15, %17 : vector<1x64xf32>
    %19 = math.rsqrt %18 : vector<1x64xf32>
    %20 = arith.mulf %16, %19 : vector<1x64xf32>
    %c0_13 = arith.constant 0 : index
    %c0_14 = arith.constant 0 : index
    %21 = vector.load %arg2[%c0_13, %c0_14] : memref<1x64xf32, #tpu.memory_space<vmem>>, vector<1x64xf32>
    %22 = arith.mulf %11, %20 : vector<1x64xf32>
    %23 = arith.subf %21, %22 : vector<1x64xf32>
    %24 = vector.broadcast %20 : vector<1x64xf32> to vector<32x64xf32>
    %25 = arith.mulf %0, %24 : vector<32x64xf32>
    %26 = vector.broadcast %23 : vector<1x64xf32> to vector<32x64xf32>
    %27 = arith.addf %25, %26 : vector<32x64xf32>
    %c0_15 = arith.constant 0 : index
    %c0_16 = arith.constant 0 : index
    %28 = vector.load %arg8[%c0_15, %c0_16] : memref<32x1xf32, #tpu.memory_space<vmem>>, vector<32x1xf32>
    %c0_17 = arith.constant 0 : index
    %c0_18 = arith.constant 0 : index
    %29 = vector.load %arg9[%c0_17, %c0_18] : memref<32x1xf32, #tpu.memory_space<vmem>>, vector<32x1xf32>
    %cst_19 = arith.constant 0.000000e+00 : f32
    %30 = vector.broadcast %cst_19 : f32 to vector<1x128xf32>
    %31 = arith.truncf %27 : vector<32x64xf32> to vector<32x64xbf16>
    %c0_20 = arith.constant 0 : index
    %c0_21 = arith.constant 0 : index
    %32 = vector.load %arg4[%c0_20, %c0_21] : memref<64x384xbf16, #tpu.memory_space<vmem>>, vector<64x384xbf16>
    %cst_22 = arith.constant dense<0.000000e+00> : vector<32x384xf32>
    %33 = tpu.matmul %31, %32, %cst_22 {dimension_numbers = #tpu.dot_dimension_numbers<[1], [0], [0], [1], [0, 0, 1, 1], [], []>} : vector<32x64xbf16>, vector<64x384xbf16>, vector<32x384xf32> -> vector<32x384xf32>
    %34 = vector.extract_strided_slice %33 {offsets = [0, 0], sizes = [32, 128], strides = [1, 1]} : vector<32x384xf32> to vector<32x128xf32>
    %35 = vector.extract_strided_slice %33 {offsets = [0, 128], sizes = [32, 128], strides = [1, 1]} : vector<32x384xf32> to vector<32x128xf32>
    %36 = vector.extract_strided_slice %33 {offsets = [0, 256], sizes = [32, 128], strides = [1, 1]} : vector<32x384xf32> to vector<32x128xf32>
    %37 = vector.extract_strided_slice %34 {offsets = [0, 0], sizes = [31, 128], strides = [1, 1]} : vector<32x128xf32> to vector<31x128xf32>
    %38 = tpu.concatenate %30, %37 in 0 : vector<1x128xf32>, vector<31x128xf32> -> vector<32x128xf32>
    %39 = vector.extract_strided_slice %36 {offsets = [1, 0], sizes = [31, 128], strides = [1, 1]} : vector<32x128xf32> to vector<31x128xf32>
    %40 = tpu.concatenate %39, %30 in 0 : vector<31x128xf32>, vector<1x128xf32> -> vector<32x128xf32>
    %41 = vector.broadcast %28 : vector<32x1xf32> to vector<32x128xf32>
    %42 = arith.mulf %41, %38 : vector<32x128xf32>
    %43 = arith.addf %35, %42 : vector<32x128xf32>
    %44 = vector.broadcast %29 : vector<32x1xf32> to vector<32x128xf32>
    %45 = arith.mulf %44, %40 : vector<32x128xf32>
    %46 = arith.addf %43, %45 : vector<32x128xf32>
    %c0_23 = arith.constant 0 : index
    %c0_24 = arith.constant 0 : index
    %47 = vector.load %arg5[%c0_23, %c0_24] : memref<1x128xf32, #tpu.memory_space<vmem>>, vector<1x128xf32>
    %48 = vector.broadcast %47 : vector<1x128xf32> to vector<32x128xf32>
    %49 = arith.addf %46, %48 : vector<32x128xf32>
    %cst_25 = arith.constant 0.000000e+00 : f32
    %50 = vector.broadcast %cst_25 : f32 to vector<32x128xf32>
    %51 = arith.maximumf %49, %50 : vector<32x128xf32>
    %52 = arith.truncf %51 : vector<32x128xf32> to vector<32x128xbf16>
    %c0_26 = arith.constant 0 : index
    %c0_27 = arith.constant 0 : index
    %53 = vector.load %arg6[%c0_26, %c0_27] : memref<128x384xbf16, #tpu.memory_space<vmem>>, vector<128x384xbf16>
    %cst_28 = arith.constant dense<0.000000e+00> : vector<32x384xf32>
    %54 = tpu.matmul %52, %53, %cst_28 {dimension_numbers = #tpu.dot_dimension_numbers<[1], [0], [0], [1], [0, 0, 1, 1], [], []>} : vector<32x128xbf16>, vector<128x384xbf16>, vector<32x384xf32> -> vector<32x384xf32>
    %55 = vector.extract_strided_slice %54 {offsets = [0, 0], sizes = [32, 128], strides = [1, 1]} : vector<32x384xf32> to vector<32x128xf32>
    %56 = vector.extract_strided_slice %54 {offsets = [0, 128], sizes = [32, 128], strides = [1, 1]} : vector<32x384xf32> to vector<32x128xf32>
    %57 = vector.extract_strided_slice %54 {offsets = [0, 256], sizes = [32, 128], strides = [1, 1]} : vector<32x384xf32> to vector<32x128xf32>
    %58 = vector.extract_strided_slice %55 {offsets = [0, 0], sizes = [31, 128], strides = [1, 1]} : vector<32x128xf32> to vector<31x128xf32>
    %59 = tpu.concatenate %30, %58 in 0 : vector<1x128xf32>, vector<31x128xf32> -> vector<32x128xf32>
    %60 = vector.extract_strided_slice %57 {offsets = [1, 0], sizes = [31, 128], strides = [1, 1]} : vector<32x128xf32> to vector<31x128xf32>
    %61 = tpu.concatenate %60, %30 in 0 : vector<31x128xf32>, vector<1x128xf32> -> vector<32x128xf32>
    %62 = vector.broadcast %28 : vector<32x1xf32> to vector<32x128xf32>
    %63 = arith.mulf %62, %59 : vector<32x128xf32>
    %64 = arith.addf %56, %63 : vector<32x128xf32>
    %65 = vector.broadcast %29 : vector<32x1xf32> to vector<32x128xf32>
    %66 = arith.mulf %65, %61 : vector<32x128xf32>
    %67 = arith.addf %64, %66 : vector<32x128xf32>
    %c0_29 = arith.constant 0 : index
    %c0_30 = arith.constant 0 : index
    %68 = vector.load %arg7[%c0_29, %c0_30] : memref<1x128xf32, #tpu.memory_space<vmem>>, vector<1x128xf32>
    %69 = vector.broadcast %68 : vector<1x128xf32> to vector<32x128xf32>
    %70 = arith.addf %67, %69 : vector<32x128xf32>
    %cst_31 = arith.constant 0.000000e+00 : f32
    %71 = vector.broadcast %cst_31 : f32 to vector<32x128xf32>
    %72 = arith.maximumf %70, %71 : vector<32x128xf32>
    %c0_32 = arith.constant 0 : index
    %c0_33 = arith.constant 0 : index
    %73 = vector.load %arg10[%c0_32, %c0_33] : memref<32x128xf32, #tpu.memory_space<vmem>>, vector<32x128xf32>
    tpu.vector_store %arg10[%c0_32, %c0_33], %72 {strides = array<i32>} : memref<32x128xf32, #tpu.memory_space<vmem>>, vector<32x128xf32>,
    return
  }
}

</mosaic_0001>

<bundles_post_ra>
// kernel: tile.28
= control target key start
LH: loop header
LB: loop body
LE: loop exit
PB: predicated region body
PF: predicated region fallthrough
CT: control target
= control target key end

     0   :  { %s28_s0 = inlined_call_operand.vmem [shape: f32[4], index: 0, kind: input, shape index: {}]   ;;  %s29_s1 = inlined_call_operand.vmem [shape: f32[16,4], index: 1, kind: output, shape index: {}]  }
   0x1   :  { %v4_v0 = vld [vmem:[%s28_s0] ss:$0 sm:$0xff] }
   0x2   :  { %5 = vst [vmem:[%s29_s1] sm:$0xff] %v4_v0 }
   0x3   :  { %8 = vst [vmem:[%s29_s1 + $0x8] sm:$0xff] %v4_v0 }

// kernel: tile.29
= control target key start
LH: loop header
LB: loop body
LE: loop exit
PB: predicated region body
PF: predicated region fallthrough
CT: control target
= control target key end

     0   :  { %s131_s10 = smov 60   ;;  %s132_s11 = smov 52   ;;  %vm3_vm0 = vcmask 31744   ;;  %vm9_vm1 = vcmask 523744   ;;  %vm15_vm2 = vcmask 490944   ;;  %vm21_vm3 = vcmask 458144   ;;  %s207_s0 = inlined_call_operand.vmem [shape: f32[16,4], index: 0, kind: input, shape index: {}]   ;;  %s208_s1 = inlined_call_operand.vmem [shape: f32[1,64], index: 1, kind: output, shape index: {}]  }
   0x1   :  { %v101_v0 = vld [vmem:[%s207_s0 + $0xf] sm:$0x1]   ;;  %v103_v1 = vld [vmem:[%s207_s0 + $0xd] sm:$0x1]   ;;  %v105_v2 = vld [vmem:[%s207_s0 + $0xb] sm:$0x1]  }
   0x2   :  { %7 = vrot.lane.b32.xlu0 %v101_v0, %s131_s10  ;;  %19 = vrot.lane.b32.xlu1 %v103_v1, %s132_s11  ;;  %s133_s14 = smov 44   ;;  %v102_v3 = vld [vmem:[%s207_s0 + $0xe] sm:$0x1]   ;;  %v104_v4 = vld [vmem:[%s207_s0 + $0xc] sm:$0x1]   ;;  %s134_s19 = smov 56  }
   0x3   :  { %31 = vrot.lane.b32.xlu2 %v105_v2, %s133_s14  ;;  %s135_s20 = smov 48   ;;  %v106_v5 = vld [vmem:[%s207_s0 + $0xa] sm:$0x1]   ;;  %s136_s23 = smov 40   ;;  %v107_v6 = vld [vmem:[%s207_s0 + $0x9] sm:$0x1]  }
   0x4   :  { %v108_v7 = vld [vmem:[%s207_s0 + $0x8] sm:$0x1]   ;;  %s137_s28 = smov 36   ;;  %s138_s29 = smov 32   ;;  %v109_v8 = vld [vmem:[%s207_s0 + $0x7] sm:$0x1]  }
   0x5   :  { %s139_s3 = smov 28   ;;  %v110_v9 = vld [vmem:[%s207_s0 + $0x6] sm:$0x1]   ;;  %v111_v10 = vld [vmem:[%s207_s0 + $0x5] sm:$0x1]   ;;  %s140_s8 = smov 24  }
   0x6   :  { %s141_s9 = smov 20   ;;  %v112_v11 = vld [vmem:[%s207_s0 + $0x4] sm:$0x1]   ;;  %s142_s12 = smov 16   ;;  %v113_v12 = vld [vmem:[%s207_s0 + $0x3] sm:$0x1]  }
   0x7   :  { %v114_v13 = vld [vmem:[%s207_s0 + $0x2] sm:$0x1]   ;;  %s143_s17 = smov 12   ;;  %s144_s18 = smov 8   ;;  %v115_v14 = vld [vmem:[%s207_s0 + $0x1] sm:$0x1]  }
   0x8   :  { %s145_s21 = smov 4   ;;  %v2_v15 = vld [vmem:[%s207_s0] sm:$0x1]   ;;  %vm27_vm4 = vcmask 425344   ;;  %vm33_vm5 = vcmask 392544   ;;  %vm39_vm6 = vcmask 359744  }
   0x9   :  { %4 = vst.msk [vmem:[#allocation0] sm:$0x1] %vm3_vm0, %v2_v15   ;;  %vm45_vm7 = vcmask 326944   ;;  %vm51_vm8 = vcmask 294144   ;;  %vm57_vm9 = vcmask 261344   ;;  %vm63_vm10 = vcmask 228544  }
   0xa   :  { %13 = vrot.lane.b32.xlu0 %v102_v3, %s134_s19  ;;  %25 = vrot.lane.b32.xlu1 %v104_v4, %s135_s20  ;;  %vm69_vm11 = vcmask 195744   ;;  %vm75_vm12 = vcmask 162944   ;;  %vm81_vm13 = vcmask 130144   ;;  %vm87_vm14 = vcmask 97344  }
   0xb   :  { %37 = vrot.lane.b32.xlu2 %v106_v5, %s136_s23  ;;  %vm93_vm15 = vcmask 64544  }
  0x12   :  { %43 = vrot.lane.b32.xlu0 %v107_v6, %s137_s28  ;;  %49 = vrot.lane.b32.xlu1 %v108_v7, %s138_s29 }
  0x13   :  { %55 = vrot.lane.b32.xlu2 %v109_v8, %s139_s3 }
  0x1a   :  { %61 = vrot.lane.b32.xlu0 %v110_v9, %s140_s8  ;;  %67 = vrot.lane.b32.xlu1 %v111_v10, %s141_s9 }
  0x1b   :  { %73 = vrot.lane.b32.xlu2 %v112_v11, %s142_s12 }
  0x22   :  { %79 = vrot.lane.b32.xlu0 %v113_v12, %s143_s17  ;;  %85 = vrot.lane.b32.xlu1 %v114_v13, %s144_s18 }
  0x23   :  { %91 = vrot.lane.b32.xlu2 %v115_v14, %s145_s21 }
  0x5d   :  { %v32_v16 = vpop.permute.xlu2 %31  }
  0x65   :  { %v38_v17 = vpop.permute.xlu2 %37  }
  0x6d   :  { %v56_v18 = vpop.permute.xlu2 %55  }
  0x74   :  { %v8_v19 = vpop.permute.xlu0 %7   ;;  %v20_v20 = vpop.permute.xlu1 %19  }
  0x75   :  { %10 = vst.msk [vmem:[#allocation0] sm:$0x1] %vm9_vm1, %v8_v19   ;;  %v74_v21 = vpop.permute.xlu2 %73  }
  0x7c   :  { %v14_v22 = vpop.permute.xlu0 %13   ;;  %v26_v23 = vpop.permute.xlu1 %25  }
  0x7d   :  { %16 = vst.msk [vmem:[#allocation0] sm:$0x1] %vm15_vm2, %v14_v22   ;;  %v92_v24 = vpop.permute.xlu2 %91  }
  0x7e   :  { %22 = vst.msk [vmem:[#allocation0] sm:$0x1] %vm21_vm3, %v20_v20  }
  0x7f   :  { %28 = vst.msk [vmem:[#allocation0] sm:$0x1] %vm27_vm4, %v26_v23  }
  0x80   :  { %34 = vst.msk [vmem:[#allocation0] sm:$0x1] %vm33_vm5, %v32_v16  }
  0x81   :  { %40 = vst.msk [vmem:[#allocation0] sm:$0x1] %vm39_vm6, %v38_v17  }
  0x84   :  { %v44_v25 = vpop.permute.xlu0 %43   ;;  %v50_v26 = vpop.permute.xlu1 %49  }
  0x85   :  { %46 = vst.msk [vmem:[#allocation0] sm:$0x1] %vm45_vm7, %v44_v25  }
  0x86   :  { %52 = vst.msk [vmem:[#allocation0] sm:$0x1] %vm51_vm8, %v50_v26  }
  0x87   :  { %58 = vst.msk [vmem:[#allocation0] sm:$0x1] %vm57_vm9, %v56_v18  }
  0x8c   :  { %v62_v27 = vpop.permute.xlu0 %61   ;;  %v68_v28 = vpop.permute.xlu1 %67  }
  0x8d   :  { %64 = vst.msk [vmem:[#allocation0] sm:$0x1] %vm63_vm10, %v62_v27  }
  0x8e   :  { %70 = vst.msk [vmem:[#allocation0] sm:$0x1] %vm69_vm11, %v68_v28  }
  0x8f   :  { %76 = vst.msk [vmem:[#allocation0] sm:$0x1] %vm75_vm12, %v74_v21  }
  0x94   :  { %v80_v29 = vpop.permute.xlu0 %79   ;;  %v86_v30 = vpop.permute.xlu1 %85  }
  0x95   :  { %82 = vst.msk [vmem:[#allocation0] sm:$0x1] %vm81_vm13, %v80_v29  }
  0x96   :  { %88 = vst.msk [vmem:[#allocation0] sm:$0x1] %vm87_vm14, %v86_v30  }
  0x97   :  { %94 = vst.msk [vmem:[#allocation0] sm:$0x1] %vm93_vm15, %v92_v24  }
  0x9e   :  { %v97_v31 = vld [vmem:[#allocation0] sm:$0x1] }
  0x9f   :  { %100 = vst [vmem:[%s208_s1] sm:$0x1] %v97_v31 }

// kernel: tile.44
= control target key start
LH: loop header
LB: loop body
LE: loop exit
PB: predicated region body
PF: predicated region fallthrough
CT: control target
= control target key end

     0   :  { %s131_s10 = smov 120   ;;  %s132_s11 = smov 104   ;;  %vm3_vm0 = vcmask 64512   ;;  %vm9_vm1 = vcmask 1048512   ;;  %vm15_vm2 = vcmask 982912   ;;  %vm21_vm3 = vcmask 917312   ;;  %s207_s0 = inlined_call_operand.vmem [shape: f32[16,8], index: 0, kind: input, shape index: {}]   ;;  %s208_s1 = inlined_call_operand.vmem [shape: f32[1,128], index: 1, kind: output, shape index: {}]  }
   0x1   :  { %v101_v0 = vld [vmem:[%s207_s0 + $0xf] sm:$0x1]   ;;  %v103_v1 = vld [vmem:[%s207_s0 + $0xd] sm:$0x1]   ;;  %v105_v2 = vld [vmem:[%s207_s0 + $0xb] sm:$0x1]  }
   0x2   :  { %7 = vrot.lane.b32.xlu0 %v101_v0, %s131_s10  ;;  %19 = vrot.lane.b32.xlu1 %v103_v1, %s132_s11  ;;  %s133_s14 = smov 88   ;;  %v102_v3 = vld [vmem:[%s207_s0 + $0xe] sm:$0x1]   ;;  %v104_v4 = vld [vmem:[%s207_s0 + $0xc] sm:$0x1]   ;;  %s134_s19 = smov 112  }
   0x3   :  { %31 = vrot.lane.b32.xlu2 %v105_v2, %s133_s14  ;;  %s135_s20 = smov 96   ;;  %v106_v5 = vld [vmem:[%s207_s0 + $0xa] sm:$0x1]   ;;  %s136_s23 = smov 80   ;;  %v107_v6 = vld [vmem:[%s207_s0 + $0x9] sm:$0x1]  }
   0x4   :  { %v108_v7 = vld [vmem:[%s207_s0 + $0x8] sm:$0x1]   ;;  %s137_s28 = smov 72   ;;  %s138_s29 = smov 64   ;;  %v109_v8 = vld [vmem:[%s207_s0 + $0x7] sm:$0x1]  }
   0x5   :  { %s139_s3 = smov 56   ;;  %v110_v9 = vld [vmem:[%s207_s0 + $0x6] sm:$0x1]   ;;  %v111_v10 = vld [vmem:[%s207_s0 + $0x5] sm:$0x1]   ;;  %s140_s8 = smov 48  }
   0x6   :  { %s141_s9 = smov 40   ;;  %v112_v11 = vld [vmem:[%s207_s0 + $0x4] sm:$0x1]   ;;  %s142_s12 = smov 32   ;;  %v113_v12 = vld [vmem:[%s207_s0 + $0x3] sm:$0x1]  }
   0x7   :  { %v114_v13 = vld [vmem:[%s207_s0 + $0x2] sm:$0x1]   ;;  %s143_s17 = smov 24   ;;  %s144_s18 = smov 16   ;;  %v115_v14 = vld [vmem:[%s207_s0 + $0x1] sm:$0x1]  }
   0x8   :  { %s145_s21 = smov 8   ;;  %v2_v15 = vld [vmem:[%s207_s0] sm:$0x1]   ;;  %vm27_vm4 = vcmask 851712   ;;  %vm33_vm5 = vcmask 786112   ;;  %vm39_vm6 = vcmask 720512  }
   0x9   :  { %4 = vst.msk [vmem:[#allocation0] sm:$0x1] %vm3_vm0, %v2_v15   ;;  %vm45_vm7 = vcmask 654912   ;;  %vm51_vm8 = vcmask 589312   ;;  %vm57_vm9 = vcmask 523712   ;;  %vm63_vm10 = vcmask 458112  }
   0xa   :  { %13 = vrot.lane.b32.xlu0 %v102_v3, %s134_s19  ;;  %25 = vrot.lane.b32.xlu1 %v104_v4, %s135_s20  ;;  %vm69_vm11 = vcmask 392512   ;;  %vm75_vm12 = vcmask 326912   ;;  %vm81_vm13 = vcmask 261312   ;;  %vm87_vm14 = vcmask 195712  }
   0xb   :  { %37 = vrot.lane.b32.xlu2 %v106_v5, %s136_s23  ;;  %vm93_vm15 = vcmask 130112  }
  0x12   :  { %43 = vrot.lane.b32.xlu0 %v107_v6, %s137_s28  ;;  %49 = vrot.lane.b32.xlu1 %v108_v7, %s138_s29 }
  0x13   :  { %55 = vrot.lane.b32.xlu2 %v109_v8, %s139_s3 }
  0x1a   :  { %61 = vrot.lane.b32.xlu0 %v110_v9, %s140_s8  ;;  %67 = vrot.lane.b32.xlu1 %v111_v10, %s141_s9 }
  0x1b   :  { %73 = vrot.lane.b32.xlu2 %v112_v11, %s142_s12 }
  0x22   :  { %79 = vrot.lane.b32.xlu0 %v113_v12, %s143_s17  ;;  %85 = vrot.lane.b32.xlu1 %v114_v13, %s144_s18 }
  0x23   :  { %91 = vrot.lane.b32.xlu2 %v115_v14, %s145_s21 }
  0x5d   :  { %v32_v16 = vpop.permute.xlu2 %31  }
  0x65   :  { %v38_v17 = vpop.permute.xlu2 %37  }
  0x6d   :  { %v56_v18 = vpop.permute.xlu2 %55  }
  0x74   :  { %v8_v19 = vpop.permute.xlu0 %7   ;;  %v20_v20 = vpop.permute.xlu1 %19  }
  0x75   :  { %10 = vst.msk [vmem:[#allocation0] sm:$0x1] %vm9_vm1, %v8_v19   ;;  %v74_v21 = vpop.permute.xlu2 %73  }
  0x7c   :  { %v14_v22 = vpop.permute.xlu0 %13   ;;  %v26_v23 = vpop.permute.xlu1 %25  }
  0x7d   :  { %16 = vst.msk [vmem:[#allocation0] sm:$0x1] %vm15_vm2, %v14_v22   ;;  %v92_v24 = vpop.permute.xlu2 %91  }
  0x7e   :  { %22 = vst.msk [vmem:[#allocation0] sm:$0x1] %vm21_vm3, %v20_v20  }
  0x7f   :  { %28 = vst.msk [vmem:[#allocation0] sm:$0x1] %vm27_vm4, %v26_v23  }
  0x80   :  { %34 = vst.msk [vmem:[#allocation0] sm:$0x1] %vm33_vm5, %v32_v16  }
  0x81   :  { %40 = vst.msk [vmem:[#allocation0] sm:$0x1] %vm39_vm6, %v38_v17  }
  0x84   :  { %v44_v25 = vpop.permute.xlu0 %43   ;;  %v50_v26 = vpop.permute.xlu1 %49  }
  0x85   :  { %46 = vst.msk [vmem:[#allocation0] sm:$0x1] %vm45_vm7, %v44_v25  }
  0x86   :  { %52 = vst.msk [vmem:[#allocation0] sm:$0x1] %vm51_vm8, %v50_v26  }
  0x87   :  { %58 = vst.msk [vmem:[#allocation0] sm:$0x1] %vm57_vm9, %v56_v18  }
  0x8c   :  { %v62_v27 = vpop.permute.xlu0 %61   ;;  %v68_v28 = vpop.permute.xlu1 %67  }
  0x8d   :  { %64 = vst.msk [vmem:[#allocation0] sm:$0x1] %vm63_vm10, %v62_v27  }
  0x8e   :  { %70 = vst.msk [vmem:[#allocation0] sm:$0x1] %vm69_vm11, %v68_v28  }
  0x8f   :  { %76 = vst.msk [vmem:[#allocation0] sm:$0x1] %vm75_vm12, %v74_v21  }
  0x94   :  { %v80_v29 = vpop.permute.xlu0 %79   ;;  %v86_v30 = vpop.permute.xlu1 %85  }
  0x95   :  { %82 = vst.msk [vmem:[#allocation0] sm:$0x1] %vm81_vm13, %v80_v29  }
  0x96   :  { %88 = vst.msk [vmem:[#allocation0] sm:$0x1] %vm87_vm14, %v86_v30  }
  0x97   :  { %94 = vst.msk [vmem:[#allocation0] sm:$0x1] %vm93_vm15, %v92_v24  }
  0x9e   :  { %v97_v31 = vld [vmem:[#allocation0] sm:$0x1] }
  0x9f   :  { %100 = vst [vmem:[%s208_s1] sm:$0x1] %v97_v31 }

// kernel: tile.43
= control target key start
LH: loop header
LB: loop body
LE: loop exit
PB: predicated region body
PF: predicated region fallthrough
CT: control target
= control target key end

     0   :  { %s28_s0 = inlined_call_operand.vmem [shape: f32[8], index: 0, kind: input, shape index: {}]   ;;  %s29_s1 = inlined_call_operand.vmem [shape: f32[16,8], index: 1, kind: output, shape index: {}]  }
   0x1   :  { %v4_v0 = vld [vmem:[%s28_s0] ss:$0 sm:$0xff] }
   0x2   :  { %5 = vst [vmem:[%s29_s1] sm:$0xff] %v4_v0 }
   0x3   :  { %8 = vst [vmem:[%s29_s1 + $0x8] sm:$0xff] %v4_v0 }

// kernel: upblock_forward.1
= control target key start
LH: loop header
LB: loop body
LE: loop exit
PB: predicated region body
PF: predicated region fallthrough
CT: control target
= control target key end

     0   :  { %vm40_vm0 = vcmask 523264   ;;  %v907_v2 = vmov 32.0   ;;  %vm323_vm5 = vcmask 1040384   ;;  %vm340_vm6 = vcmask 1046528   ;;  %s1348_s3 = inlined_call_operand.vmem [shape: f32[64,64], index: 3, kind: input, shape index: {}]   ;;  %s1349_s0 = inlined_call_operand.vmem [shape: f32[32,64], index: 0, kind: input, shape index: {}]   ;;  %s1350_s4 = inlined_call_operand.vmem [shape: bf16[64,384], index: 4, kind: input, shape index: {}]   ;;  %s1351_s8 = inlined_call_operand.vmem [shape: f32[32,1], index: 8, kind: input, shape index: {}]   ;;  %s1352_s9 = inlined_call_operand.vmem [shape: f32[32,1], index: 9, kind: input, shape index: {}]   ;;  %s1353_s1 = inlined_call_operand.vmem [shape: f32[1,64], index: 1, kind: input, shape index: {}]   ;;  %s1354_s2 = inlined_call_operand.vmem [shape: f32[1,64], index: 2, kind: input, shape index: {}]   ;;  %s1355_s5 = inlined_call_operand.vmem [shape: f32[1,128], index: 5, kind: input, shape index: {}]   ;;  %s1356_s6 = inlined_call_operand.vmem [shape: bf16[128,384], index: 6, kind: input, shape index: {}]   ;;  %s1357_s7 = inlined_call_operand.vmem [shape: f32[1,128], index: 7, kind: input, shape index: {}]   ;;  %s1358_s10 = inlined_call_operand.vmem [shape: f32[32,128], index: 10, kind: output, shape index: {}]  }
   0x1   :  { %v87_v0 = vld [vmem:[%s1348_s3 + $0x38] sm:$0xff]  ;;  %v86_v1 = vld [vmem:[%s1348_s3 + $0x30] sm:$0xff]  ;;  %903 = vrcp.f32 %v907_v2  ;;  %v85_v3 = vld [vmem:[%s1348_s3 + $0x28] sm:$0xff] }
   0x2   :  { %99 = vmatpush.msra.mxu0 %v87_v0  ;;  %122 = vmatpush.msra.mxu1 %v87_v0  ;;  %v976_v4 = vld [vmem:[%s1349_s0] sm:$0xff]  ;;  %v981_v5 = vld [vmem:[%s1349_s0 + $0x8] sm:$0xff]  ;;  %v986_v6 = vld [vmem:[%s1349_s0 + $0x10] sm:$0xff] }
   0x3   :  { %v991_v7 = vld [vmem:[%s1349_s0 + $0x18] sm:$0xff]  ;;  %v41_v8 = vsel %vm40_vm0, %v976_v4, 0.0  ;;  %v62_v9 = vmul.f32 %v976_v4, %v976_v4  ;;  %v84_v10 = vld [vmem:[%s1348_s3 + $0x20] sm:$0xff]  ;;  %v42_v11 = vsel %vm40_vm0, %v981_v5, 0.0  ;;  %v44_v12 = vsel %vm40_vm0, %v986_v6, 0.0  ;;  %v82_v25 = vld [vmem:[%s1348_s3 + $0x10] sm:$0xff] }
   0x4   :  { %100 = vmatpush.msra.mxu0 %v86_v1  ;;  %123 = vmatpush.msra.mxu1 %v86_v1  ;;  %v63_v13 = vmul.f32 %v981_v5, %v981_v5  ;;  %v43_v14 = vadd.f32 %v42_v11, %v41_v8  ;;  %v64_v15 = vmul.f32 %v986_v6, %v986_v6  ;;  %v83_v19 = vld [vmem:[%s1348_s3 + $0x18] sm:$0xff]  ;;  %v46_v20 = vsel %vm40_vm0, %v991_v7, 0.0  ;;  %v81_v31 = vld [vmem:[%s1348_s3 + $0x8] sm:$0xff]  ;;  %v80_v34 = vld [vmem:[%s1348_s3] sm:$0xff] }
   0x5   :  { %v65_v16 = vmul.f32 %v991_v7, %v991_v7  ;;  %v66_v17 = vsel %vm40_vm0, %v62_v9, 0.0  ;;  %v748_v51 = vld [vmem:[%s1350_s4 + $0x48] sm:$0xf]  ;;  %v870_v52 = vld [vmem:[%s1350_s4 + $0x50] sm:$0xf0] }
   0x6   :  { %101 = vmatpush.msra.mxu0 %v85_v3  ;;  %124 = vmatpush.msra.mxu1 %v85_v3  ;;  %v67_v21 = vsel %vm40_vm0, %v63_v13, 0.0  ;;  %v45_v22 = vadd.f32 %v44_v12, %v43_v14  ;;  %v69_v26 = vsel %vm40_vm0, %v64_v15, 0.0  ;;  %v869_v53 = vld [vmem:[%s1350_s4 + $0x4c] sm:$0xf]  ;;  %v749_v54 = vor.u32 %v870_v52, %v748_v51  ;;  %v750_v55 = vld [vmem:[%s1350_s4 + $0x54] sm:$0xf0] }
   0x7   :  { %v904_v18 = vpop.eup %903  ;;  %v68_v24 = vadd.f32 %v67_v21, %v66_v17  ;;  %v71_v27 = vsel %vm40_vm0, %v65_v16, 0.0  ;;  %v756_v56 = vld [vmem:[%s1350_s4 + $0x50] sm:$0xf]  ;;  %v871_v57 = vld [vmem:[%s1350_s4 + $0x58] sm:$0xf0]  ;;  %v753_v58 = vor.u32 %v869_v53, %v750_v55 }
   0x8   :  { %102 = vmatpush.msra.mxu0 %v84_v10  ;;  %125 = vmatpush.msra.mxu1 %v84_v10  ;;  %v55_v23 = vmul.f32 32.0, %v904_v18  ;;  %v47_v28 = vadd.f32 %v46_v20, %v45_v22  ;;  %vm59_vm1 = vweird.f32 %v904_v18  ;;  %v757_v59 = vor.u32 %v871_v57, %v756_v56  ;;  %v736_v60 = vld [vmem:[%s1350_s4 + $0x30] sm:$0xf]  ;;  %v867_v61 = vld [vmem:[%s1350_s4 + $0x38] sm:$0xf0] }
   0x9   :  { %v70_v30 = vadd.f32 %v69_v26, %v68_v24  ;;  %266 = vmatpush.bf16.msra.mxu2 %v749_v54  ;;  %285 = vmatpush.bf16.msra.mxu3 %v753_v58  ;;  %v866_v62 = vld [vmem:[%s1350_s4 + $0x34] sm:$0xf]  ;;  %v737_v63 = vor.u32 %v867_v61, %v736_v60  ;;  %v738_v0 = vld [vmem:[%s1350_s4 + $0x3c] sm:$0xf0]  ;;  %v744_v1 = vld [vmem:[%s1350_s4 + $0x38] sm:$0xf] }
   0xa   :  { %103 = vmatpush.msra.mxu0 %v83_v19  ;;  %126 = vmatpush.msra.mxu1 %v83_v19  ;;  %v56_v29 = vsub.f32 1.0, %v55_v23  ;;  %v48_v32 = vrot.slane %v47_v28, 4  ;;  %v868_v2 = vld [vmem:[%s1350_s4 + $0x40] sm:$0xf0]  ;;  %v741_v3 = vor.u32 %v866_v62, %v738_v0  ;;  %v724_v9 = vld [vmem:[%s1350_s4 + $0x18] sm:$0xf] }
   0xb   :  { %v72_v33 = vadd.f32 %v71_v27, %v70_v30  ;;  %v745_v8 = vor.u32 %v868_v2, %v744_v1  ;;  %v864_v10 = vld [vmem:[%s1350_s4 + $0x20] sm:$0xf0]  ;;  %v863_v11 = vld [vmem:[%s1350_s4 + $0x1c] sm:$0xf]  ;;  %v726_v13 = vld [vmem:[%s1350_s4 + $0x24] sm:$0xf0] }
   0xc   :  { %104 = vmatpush.msra.mxu0 %v82_v25  ;;  %127 = vmatpush.msra.mxu1 %v82_v25  ;;  %v57_v35 = vmul.f32 %v904_v18, %v56_v29  ;;  %v49_v36 = vadd.f32 %v48_v32, %v47_v28  ;;  %v725_v12 = vor.u32 %v864_v10, %v724_v9  ;;  %v732_v14 = vld [vmem:[%s1350_s4 + $0x20] sm:$0xf]  ;;  %v865_v15 = vld [vmem:[%s1350_s4 + $0x28] sm:$0xf0]  ;;  %v860_v20 = vld [vmem:[%s1350_s4 + $0x4] sm:$0xf] }
   0xd   :  { %v73_v37 = vrot.slane %v72_v33, 4  ;;  %267 = vmatpush.bf16.msra.mxu2 %v737_v63  ;;  %286 = vmatpush.bf16.msra.mxu3 %v741_v3  ;;  %v729_v16 = vor.u32 %v863_v11, %v726_v13  ;;  %v733_v17 = vor.u32 %v865_v15, %v732_v14  ;;  %v861_v19 = vld [vmem:[%s1350_s4 + $0x8] sm:$0xf0]  ;;  %v714_v22 = vld [vmem:[%s1350_s4 + $0xc] sm:$0xf0]  ;;  %v166_v32 = vld [vmem:[%s1351_s8] sm:$0xff] }
   0xe   :  { %105 = vmatpush.msra.mxu0 %v81_v31  ;;  %128 = vmatpush.msra.mxu1 %v81_v31  ;;  %v50_v38 = vrot.slane %v49_v36, 2  ;;  %v58_v40 = vadd.f32 %v904_v18, %v57_v35  ;;  %v720_v23 = vld [vmem:[%s1350_s4 + $0x8] sm:$0xf]  ;;  %v862_v24 = vld [vmem:[%s1350_s4 + $0x10] sm:$0xf0]  ;;  %v717_v25 = vor.u32 %v860_v20, %v714_v22  ;;  %v169_v52 = vld [vmem:[%s1351_s8 + $0x18] sm:$0xff] }
   0xf   :  { %v74_v39 = vadd.f32 %v73_v37, %v72_v33  ;;  %v721_v26 = vor.u32 %v862_v24, %v720_v23  ;;  %v170_v33 = vld [vmem:[%s1352_s9] sm:$0xff]  ;;  %v171_v37 = vld [vmem:[%s1352_s9 + $0x8] sm:$0xff]  ;;  %v895_v0 = vld [vmem:[%s1356_s6 + $0xb8] sm:$0xf0] }
  0x10   :  { %106 = vmatpush.msra.mxu0 %v80_v34  ;;  %129 = vmatpush.msra.mxu1 %v80_v34  ;;  %v51_v41 = vadd.f32 %v50_v38, %v49_v36  ;;  %v60_v45 = vsel %vm59_vm1, %v904_v18, %v58_v40  ;;  %v712_v18 = vld [vmem:[%s1350_s4] sm:$0xf]  ;;  %v908_v34 = vmov 0   ;;  %v167_v36 = vld [vmem:[%s1351_s8 + $0x8] sm:$0xff]  ;;  %v894_v1 = vld [vmem:[%s1356_s6 + $0xb0] sm:$0xf0] }
  0x11   :  { %v75_v42 = vrot.slane %v74_v39, 2  ;;  %268 = vmatpush.bf16.msra.mxu2 %v725_v12  ;;  %v713_v21 = vor.u32 %v861_v19, %v712_v18  ;;  %287 = vmatpush.bf16.msra.mxu3 %v729_v16  ;;  %v893_v2 = vld [vmem:[%s1356_s6 + $0xac] sm:$0xf]  ;;  %v852_v3 = vld [vmem:[%s1356_s6 + $0xb4] sm:$0xf0] }
  0x12   :  { %v52_v43 = vrot.slane %v51_v41, 1  ;;  %304 = vmatpush.bf16.msrb.mxu0 %v757_v59  ;;  %898 = vset.pattern.permute.xlu0 %v908_v34  ;;  %v855_v9 = vor.u32 %v893_v2, %v852_v3  ;;  %v846_v10 = vld [vmem:[%s1356_s6 + $0x98] sm:$0xf]  ;;  %v892_v11 = vld [vmem:[%s1356_s6 + $0xa0] sm:$0xf0] }
  0x13   :  { %v76_v44 = vadd.f32 %v75_v42, %v74_v39  ;;  %899 = vset.pattern.permute.xlu1 %v908_v34  ;;  %355 = vperm.xlu0 %898, %v166_v32   ;;  %v136_v42 = vld [vmem:[%s1353_s1] sm:$0x1]  ;;  %v838_v12 = vld [vmem:[%s1356_s6 + $0x90] sm:$0xf]  ;;  %v847_v13 = vor.u32 %v892_v11, %v846_v10  ;;  %v891_v14 = vld [vmem:[%s1356_s6 + $0x98] sm:$0xf0] }
  0x14   :  { %v53_v46 = vadd.f32 %v52_v43, %v51_v41  ;;  %383 = vperm.xlu1 %899, %v170_v33   ;;  %900 = vset.pattern.permute.xlu2 %v908_v34  ;;  %v890_v15 = vld [vmem:[%s1356_s6 + $0x94] sm:$0xf]  ;;  %v840_v16 = vld [vmem:[%s1356_s6 + $0x9c] sm:$0xf0]  ;;  %v889_v20 = vld [vmem:[%s1356_s6 + $0x88] sm:$0xf0] }
  0x15   :  { %v77_v47 = vrot.slane %v76_v44, 1  ;;  %269 = vmatpush.bf16.msra.mxu2 %v713_v21  ;;  %288 = vmatpush.bf16.msra.mxu3 %v717_v25  ;;  %v843_v18 = vor.u32 %v890_v15, %v840_v16  ;;  %v834_v19 = vld [vmem:[%s1356_s6 + $0x80] sm:$0xf]  ;;  %v826_v21 = vld [vmem:[%s1356_s6 + $0x78] sm:$0xf] }
  0x16   :  { %v61_v48 = vmul.f32 %v60_v45, %v53_v46  ;;  %305 = vmatpush.bf16.msrb.mxu0 %v745_v8  ;;  %v168_v46 = vld [vmem:[%s1351_s8 + $0x10] sm:$0xff]  ;;  %v835_v22 = vor.u32 %v889_v20, %v834_v19  ;;  %v888_v23 = vld [vmem:[%s1356_s6 + $0x80] sm:$0xf0]  ;;  %v887_v24 = vld [vmem:[%s1356_s6 + $0x7c] sm:$0xf] }
  0x17   :  { %v78_v49 = vadd.f32 %v77_v47, %v76_v44  ;;  %v172_v44 = vld [vmem:[%s1352_s9 + $0x10] sm:$0xff]  ;;  %365 = vperm.xlu2 %900, %v168_v46   ;;  %v827_v25 = vor.u32 %v888_v23, %v826_v21  ;;  %v885_v32 = vld [vmem:[%s1356_s6 + $0x68] sm:$0xf0]  ;;  %v884_v33 = vld [vmem:[%s1356_s6 + $0x64] sm:$0xf] }
  0x18   :  { %708 = vmatmul.msk.f32.vlgmr.msra.gmra.mxu0 %vm40_vm0, %v61_v48  ;;  %v816_v34 = vld [vmem:[%s1356_s6 + $0x6c] sm:$0xf0]  ;;  %v798_v46 = vld [vmem:[%s1356_s6 + $0x38] sm:$0xf] }
  0x19   :  { %v79_v50 = vmul.f32 %v78_v49, %v60_v45  ;;  %v173_v45 = vld [vmem:[%s1352_s9 + $0x18] sm:$0xff]  ;;  %v149_v49 = vld [vmem:[%s1354_s2] sm:$0x1]  ;;  %602 = vmatpush.bf16.msrb.mxu2 %v855_v9  ;;  %v768_v2 = vld [vmem:[%s1356_s6 + $0xc] sm:$0xf0] }
  0x1a   :  { %306 = vmatpush.bf16.msrb.mxu0 %v733_v17  ;;  %v839_v17 = vor.u32 %v891_v14, %v838_v12 }
  0x1b   :  { %709 = vmatmul.msk.f32.vlgmr.msra.gmra.mxu1 %vm40_vm0, %v79_v50  ;;  %360 = vperm.xlu0 %898, %v167_v36   ;;  %v819_v36 = vor.u32 %v884_v33, %v816_v34 }
  0x1c   :  { %388 = vperm.xlu1 %899, %v171_v37   ;;  %v810_v37 = vld [vmem:[%s1356_s6 + $0x50] sm:$0xf] }
  0x1d   :  { %603 = vmatpush.bf16.msrb.mxu2 %v843_v18 }
  0x1e   :  { %307 = vmatpush.bf16.msrb.mxu0 %v721_v26  ;;  %v828_v26 = vld [vmem:[%s1356_s6 + $0x84] sm:$0xf0] }
  0x1f   :  { %370 = vperm.xlu2 %900, %v169_v52   ;;  %v792_v52 = vld [vmem:[%s1356_s6 + $0x3c] sm:$0xf0] }
  0x23   :  { %393 = vperm.xlu0 %898, %v172_v44  }
  0x24   :  { %398 = vperm.xlu1 %899, %v173_v45  }
  0x85   :  { %v1286_v12 = vpop.permute.xlu0 %355 }
  0x86   :  { %v1289_v16 = vpop.permute.xlu1 %383 }
  0x8e   :  { %v1301_v33 = vpop.permute.xlu1 %388 }
  0x95   :  { %v108_v27 = vpop.f32.mrf.mxu0 }
  0x96   :  { %v134_v28 = vmul.f32 %v108_v27, %v108_v27 }
  0x98   :  { %v131_v29 = vpop.f32.mrf.mxu1 }
  0x99   :  { %v135_v30 = vsub.f32 %v131_v29, %v134_v28  ;;  %v822_v28 = vld [vmem:[%s1356_s6 + $0x68] sm:$0xf]  ;;  %v886_v29 = vld [vmem:[%s1356_s6 + $0x70] sm:$0xf0] }
  0x9b   :  { %v137_v31 = vadd.f32 1e-05, %v135_v30  ;;  %v814_v30 = vld [vmem:[%s1356_s6 + $0x60] sm:$0xf] }
  0x9d   :  { %905 = vrsqrt.f32 %v137_v31  ;;  %vm144_vm3 = vweird.f32 %v137_v31 }
  0xa3   :  { %v906_v35 = vpop.eup %905 }
  0xa4   :  { %v139_v38 = vmul.f32 %v906_v35, %v137_v31  ;;  %vm145_vm2 = vweird.f32 %v906_v35  ;;  %v823_v31 = vor.u32 %v886_v29, %v822_v28 }
  0xa5   :  { %vm146_vm4 = vmor %vm144_vm3, %vm145_vm2 }
  0xa6   :  { %v140_v39 = vmul.f32 %v906_v35, %v139_v38  ;;  %v883_v38 = vld [vmem:[%s1356_s6 + $0x58] sm:$0xf0] }
  0xa8   :  { %v141_v40 = vmul.f32 0.5, %v140_v39  ;;  %v802_v39 = vld [vmem:[%s1356_s6 + $0x48] sm:$0xf] }
  0xaa   :  { %v142_v41 = vsub.f32 1.5, %v141_v40  ;;  %v811_v40 = vor.u32 %v883_v38, %v810_v37 }
  0xac   :  { %v143_v43 = vmul.f32 %v906_v35, %v142_v41  ;;  %v882_v41 = vld [vmem:[%s1356_s6 + $0x50] sm:$0xf0] }
  0xad   :  { %v803_v44 = vor.u32 %v882_v41, %v802_v39  ;;  %v1305_v39 = vpop.permute.xlu2 %365 }
  0xae   :  { %v147_v47 = vsel %vm146_vm4, %v906_v35, %v143_v43  ;;  %v815_v35 = vor.u32 %v885_v32, %v814_v30  ;;  %v804_v43 = vld [vmem:[%s1356_s6 + $0x54] sm:$0xf0]  ;;  %v901_v32 = vld [vmem:[%s1355_s5] ss:$0 sm:$0xff] }
  0xaf   :  { %v148_v48 = vmul.f32 %v147_v47, %v136_v42  ;;  %v881_v42 = vld [vmem:[%s1356_s6 + $0x4c] sm:$0xf]  ;;  %v880_v47 = vld [vmem:[%s1356_s6 + $0x40] sm:$0xf0] }
  0xb0   :  { %v807_v45 = vor.u32 %v881_v42, %v804_v43 }
  0xb1   :  { %v150_v50 = vmul.f32 %v148_v48, %v108_v27  ;;  %v153_v51 = vperm.slane %v148_v48, 0  ;;  %v831_v27 = vor.u32 %v887_v24, %v828_v26  ;;  %v790_v48 = vld [vmem:[%s1356_s6 + $0x30] sm:$0xf]  ;;  %v1294_v26 = vpop.permute.xlu0 %360 }
  0xb3   :  { %v151_v53 = vsub.f32 %v149_v49, %v150_v50  ;;  %v155_v54 = vmul.f32 %v153_v51, %v976_v4  ;;  %v156_v55 = vmul.f32 %v153_v51, %v981_v5  ;;  %v157_v60 = vmul.f32 %v153_v51, %v986_v6  ;;  %v858_v5 = vld [vmem:[%s1356_s6 + $0xb0] sm:$0xf]  ;;  %v850_v6 = vld [vmem:[%s1356_s6 + $0xa8] sm:$0xf]  ;;  %604 = vmatpush.bf16.msrb.mxu2 %v831_v27  ;;  %v879_v50 = vld [vmem:[%s1356_s6 + $0x38] sm:$0xf0] }
  0xb4   :  { %v158_v61 = vmul.f32 %v153_v51, %v991_v7  ;;  %v859_v7 = vor.u32 %v895_v0, %v858_v5  ;;  %v851_v8 = vor.u32 %v894_v1, %v850_v6  ;;  %v799_v49 = vor.u32 %v880_v47, %v798_v46  ;;  %v878_v51 = vld [vmem:[%s1356_s6 + $0x34] sm:$0xf]  ;;  %v766_v0 = vld [vmem:[%s1356_s6] sm:$0xf]  ;;  %v872_v1 = vld [vmem:[%s1356_s6 + $0x4] sm:$0xf] }
  0xb5   :  { %v160_v56 = vperm.slane %v151_v53, 0  ;;  %v791_v53 = vor.u32 %v879_v50, %v790_v48  ;;  %v874_v5 = vld [vmem:[%s1356_s6 + $0x10] sm:$0xf0] }
  0xb6   :  { %621 = vmatpush.bf16.msrb.mxu3 %v859_v7  ;;  %583 = vmatpush.bf16.msrb.mxu1 %v851_v8  ;;  %v873_v7 = vld [vmem:[%s1356_s6 + $0x8] sm:$0xf0]  ;;  %v771_v8 = vor.u32 %v872_v1, %v768_v2 }
  0xb7   :  { %v162_v57 = vadd.f32 %v160_v56, %v155_v54  ;;  %v163_v58 = vadd.f32 %v160_v56, %v156_v55  ;;  %v164_v62 = vadd.f32 %v160_v56, %v157_v60  ;;  %v165_v63 = vadd.f32 %v160_v56, %v158_v61  ;;  %605 = vmatpush.bf16.msrb.mxu2 %v819_v36  ;;  %v786_v55 = vld [vmem:[%s1356_s6 + $0x20] sm:$0xf]  ;;  %v877_v56 = vld [vmem:[%s1356_s6 + $0x28] sm:$0xf0]  ;;  %v875_v60 = vld [vmem:[%s1356_s6 + $0x1c] sm:$0xf] }
  0xb8   :  { %v795_v54 = vor.u32 %v878_v51, %v792_v52  ;;  %v780_v61 = vld [vmem:[%s1356_s6 + $0x24] sm:$0xf0]  ;;  %v767_v3 = vor.u32 %v873_v7, %v766_v0 }
  0xb9   :  { %v174_v59 = vpack.c.bf16 %v163_v58, %v162_v57  ;;  %v175_v4 = vpack.c.bf16 %v165_v63, %v164_v62  ;;  %v778_v57 = vld [vmem:[%s1356_s6 + $0x18] sm:$0xf]  ;;  %v787_v58 = vor.u32 %v877_v56, %v786_v55  ;;  %v783_v63 = vor.u32 %v875_v60, %v780_v61  ;;  %v1310_v51 = vpop.permute.xlu0 %393 }
  0xba   :  { %622 = vmatpush.bf16.msrb.mxu3 %v847_v13  ;;  %584 = vmatpush.bf16.msrb.mxu1 %v839_v17 }
  0xbb   :  { %758 = vmatmul.msk.bf16.vlgmr.msra.gmra.mxu2 %vm40_vm0, %v174_v59  ;;  %760 = vmatmul.msk.bf16.vlgmr.msra.gmra.mxu3 %vm40_vm0, %v174_v59 }
  0xbc   :  { %762 = vmatmul.msk.bf16.vlgmr.msrb.gmra.mxu0 %vm40_vm0, %v174_v59  ;;  %606 = vmatpush.bf16.msrb.mxu2 %v807_v45  ;;  %v876_v59 = vld [vmem:[%s1356_s6 + $0x20] sm:$0xf0] }
  0xbd   :  { %v779_v62 = vor.u32 %v876_v59, %v778_v57 }
  0xbe   :  { %623 = vmatpush.bf16.msrb.mxu3 %v835_v22  ;;  %585 = vmatpush.bf16.msrb.mxu1 %v827_v25 }
  0xc0   :  { %607 = vmatpush.bf16.msrb.mxu2 %v795_v54 }
  0xc2   :  { %624 = vmatpush.bf16.msrb.mxu3 %v823_v31  ;;  %586 = vmatpush.bf16.msrb.mxu1 %v815_v35 }
  0xc4   :  { %608 = vmatpush.bf16.msrb.mxu2 %v783_v63 }
  0xc6   :  { %625 = vmatpush.bf16.msrb.mxu3 %v811_v40  ;;  %587 = vmatpush.bf16.msrb.mxu1 %v803_v44 }
  0xc8   :  { %609 = vmatpush.bf16.msrb.mxu2 %v771_v8 }
  0xca   :  { %626 = vmatpush.bf16.msrb.mxu3 %v799_v49  ;;  %588 = vmatpush.bf16.msrb.mxu1 %v791_v53 }
  0xcb   :  { %759 = vmatmul.msk.bf16.gmra.mxu2 %vm40_vm0, %v175_v4  ;;  %761 = vmatmul.msk.bf16.gmra.mxu3 %vm40_vm0, %v175_v4 }
  0xcc   :  { %763 = vmatmul.msk.bf16.gmra.mxu0 %vm40_vm0, %v175_v4  ;;  %v774_v4 = vld [vmem:[%s1356_s6 + $0x8] sm:$0xf] }
  0xcd   :  { %v775_v6 = vor.u32 %v874_v5, %v774_v4 }
  0xce   :  { %627 = vmatpush.bf16.msrb.mxu3 %v787_v58  ;;  %589 = vmatpush.bf16.msrb.mxu1 %v779_v62  ;;  %v371_v58 = vpop.permute.xlu2 %370  ;;  %v1315_v62 = vpop.permute.xlu1 %398 }
  0xd2   :  { %628 = vmatpush.bf16.msrb.mxu3 %v775_v6  ;;  %590 = vmatpush.bf16.msrb.mxu1 %v767_v3 }
 0x139   :  { %v309_v9 = vpop.f32.mrf.mxu0 }
 0x13a   :  { %v341_v17 = vrot.slane %v309_v9, 1 }
 0x13e   :  { %v271_v10 = vpop.f32.mrf.mxu2  ;;  %v290_v11 = vpop.f32.mrf.mxu3 }
 0x13f   :  { %v324_v13 = vrot.slane %v271_v10, 7 }
 0x141   :  { %v335_v14 = vsel %vm323_vm5, 0.0, %v324_v13  ;;  %v311_v15 = vpop.f32.mrf.mxu0 }
 0x142   :  { %v342_v18 = vrot.slane %v311_v15, 1  ;;  %v373_v19 = vmul.f32 %v1286_v12, %v335_v14 }
 0x144   :  { %v343_v20 = vsel %vm340_vm6, %v341_v17, %v342_v18  ;;  %v377_v22 = vadd.f32 %v373_v19, %v290_v11 }
 0x145   :  { %v401_v23 = vmul.f32 %v1289_v16, %v343_v20 }
 0x146   :  { %v273_v21 = vpop.f32.mrf.mxu2  ;;  %v292_v25 = vpop.f32.mrf.mxu3 }
 0x147   :  { %v325_v24 = vrot.slane %v273_v21, 7  ;;  %v405_v31 = vadd.f32 %v401_v23, %v377_v22 }
 0x149   :  { %v326_v27 = vsel %vm323_vm5, %v324_v13, %v325_v24  ;;  %v314_v28 = vpop.f32.mrf.mxu0  ;;  %v413_v41 = vadd.f32 %v901_v32, %v405_v31 }
 0x14a   :  { %v374_v29 = vmul.f32 %v1294_v26, %v326_v27  ;;  %v344_v30 = vrot.slane %v314_v28, 1  ;;  %v902_v27 = vld [vmem:[%s1357_s7] ss:$0 sm:$0xff] }
 0x14b   :  { %v417_v48 = vmax.f32 %v413_v41, 0.0 }
 0x14c   :  { %v378_v34 = vadd.f32 %v374_v29, %v292_v25  ;;  %v345_v35 = vsel %vm340_vm6, %v342_v18, %v344_v30 }
 0x14d   :  { %v402_v36 = vmul.f32 %v1301_v33, %v345_v35 }
 0x14e   :  { %v276_v37 = vpop.f32.mrf.mxu2  ;;  %v295_v42 = vpop.f32.mrf.mxu3 }
 0x14f   :  { %v406_v38 = vadd.f32 %v402_v36, %v378_v34  ;;  %v327_v40 = vrot.slane %v276_v37, 7 }
 0x151   :  { %v328_v43 = vsel %vm323_vm5, %v325_v24, %v327_v40  ;;  %v316_v44 = vpop.f32.mrf.mxu0  ;;  %v414_v45 = vadd.f32 %v901_v32, %v406_v38 }
 0x152   :  { %v375_v46 = vmul.f32 %v1305_v39, %v328_v43  ;;  %v346_v47 = vrot.slane %v316_v44, 1 }
 0x153   :  { %v418_v49 = vmax.f32 %v414_v45, 0.0 }
 0x154   :  { %v347_v50 = vsel %vm340_vm6, %v344_v30, %v346_v47  ;;  %v379_v53 = vadd.f32 %v375_v46, %v295_v42  ;;  %v352_v57 = vsel %vm340_vm6, %v346_v47, 0.0 }
 0x155   :  { %v421_v52 = vpack.c.bf16 %v418_v49, %v417_v48  ;;  %v403_v54 = vmul.f32 %v1310_v51, %v347_v50  ;;  %v404_v4 = vmul.f32 %v1315_v62, %v352_v57 }
 0x156   :  { %v278_v55 = vpop.f32.mrf.mxu2  ;;  %v297_v63 = vpop.f32.mrf.mxu3 }
 0x157   :  { %v329_v56 = vrot.slane %v278_v55, 7  ;;  %591 = vmatmul.bf16.vlgmr.msrb.gmra.mxu1 %v421_v52  ;;  %610 = vmatmul.bf16.vlgmr.msrb.gmra.mxu2 %v421_v52  ;;  %v407_v60 = vadd.f32 %v403_v54, %v379_v53 }
 0x158   :  { %629 = vmatmul.bf16.vlgmr.msrb.gmra.mxu3 %v421_v52 }
 0x159   :  { %v330_v59 = vsel %vm323_vm5, %v327_v40, %v329_v56  ;;  %v415_v6 = vadd.f32 %v901_v32, %v407_v60 }
 0x15a   :  { %v376_v61 = vmul.f32 %v371_v58, %v330_v59 }
 0x15b   :  { %v419_v2 = vmax.f32 %v415_v6, 0.0 }
 0x15c   :  { %v380_v5 = vadd.f32 %v376_v61, %v297_v63 }
 0x15e   :  { %v408_v0 = vadd.f32 %v404_v4, %v380_v5 }
 0x160   :  { %v416_v7 = vadd.f32 %v901_v32, %v408_v0 }
 0x162   :  { %v420_v1 = vmax.f32 %v416_v7, 0.0 }
 0x164   :  { %v422_v3 = vpack.c.bf16 %v420_v1, %v419_v2 }
 0x167   :  { %596 = vmatmul.bf16.gmra.mxu1 %v422_v3  ;;  %615 = vmatmul.bf16.gmra.mxu2 %v422_v3 }
 0x168   :  { %634 = vmatmul.bf16.gmra.mxu3 %v422_v3 }
 0x1d4   :  { %v592_v8 = vpop.f32.mrf.mxu1 }
 0x1d5   :  { %v644_v11 = vrot.slane %v592_v8, 7 }
 0x1d7   :  { %v655_v14 = vsel %vm323_vm5, 0.0, %v644_v11 }
 0x1d8   :  { %v672_v17 = vmul.f32 %v655_v14, %v1286_v12 }
 0x1da   :  { %v611_v9 = vpop.f32.mrf.mxu2 }
 0x1db   :  { %v630_v10 = vpop.f32.mrf.mxu3  ;;  %v676_v24 = vadd.f32 %v672_v17, %v611_v9 }
 0x1dc   :  { %v594_v13 = vpop.f32.mrf.mxu1  ;;  %v660_v19 = vrot.slane %v630_v10, 1 }
 0x1dd   :  { %v645_v20 = vrot.slane %v594_v13, 7 }
 0x1df   :  { %v646_v28 = vsel %vm323_vm5, %v644_v11, %v645_v20 }
 0x1e0   :  { %v673_v12 = vmul.f32 %v646_v28, %v1294_v26 }
 0x1e2   :  { %v613_v15 = vpop.f32.mrf.mxu2 }
 0x1e3   :  { %v632_v18 = vpop.f32.mrf.mxu3 }
 0x1e4   :  { %v661_v21 = vrot.slane %v632_v18, 1  ;;  %v597_v22 = vpop.f32.mrf.mxu1 }
 0x1e5   :  { %v647_v34 = vrot.slane %v597_v22, 7 }
 0x1e6   :  { %v662_v23 = vsel %vm340_vm6, %v660_v19, %v661_v21 }
 0x1e7   :  { %v680_v25 = vmul.f32 %v662_v23, %v1289_v16  ;;  %v677_v16 = vadd.f32 %v673_v12, %v613_v15  ;;  %v648_v42 = vsel %vm323_vm5, %v645_v20, %v647_v34 }
 0x1e8   :  { %v674_v44 = vmul.f32 %v648_v42, %v1305_v39 }
 0x1e9   :  { %v684_v29 = vadd.f32 %v680_v25, %v676_v24 }
 0x1ea   :  { %v616_v30 = vpop.f32.mrf.mxu2 }
 0x1eb   :  { %v692_v31 = vadd.f32 %v902_v27, %v684_v29  ;;  %v635_v32 = vpop.f32.mrf.mxu3  ;;  %v678_v54 = vadd.f32 %v674_v44, %v616_v30 }
 0x1ec   :  { %v663_v35 = vrot.slane %v635_v32, 1  ;;  %v599_v36 = vpop.f32.mrf.mxu1 }
 0x1ed   :  { %v696_v37 = vmax.f32 %v692_v31, 0.0  ;;  %v649_v38 = vrot.slane %v599_v36, 7 }
 0x1ee   :  { %v664_v40 = vsel %vm340_vm6, %v661_v21, %v663_v35 }
 0x1ef   :  { %700 = vst [vmem:[%s1358_s10] sm:$0xff] %v696_v37  ;;  %v681_v41 = vmul.f32 %v664_v40, %v1301_v33  ;;  %v650_v26 = vsel %vm323_vm5, %v647_v34, %v649_v38 }
 0x1f0   :  { %v675_v46 = vmul.f32 %v650_v26, %v371_v58 }
 0x1f1   :  { %v685_v43 = vadd.f32 %v681_v41, %v677_v16 }
 0x1f2   :  { %v618_v48 = vpop.f32.mrf.mxu2 }
 0x1f3   :  { %v693_v45 = vadd.f32 %v902_v27, %v685_v43  ;;  %v637_v47 = vpop.f32.mrf.mxu3  ;;  %v679_v33 = vadd.f32 %v675_v46, %v618_v48 }
 0x1f4   :  { %v665_v49 = vrot.slane %v637_v47, 1 }
 0x1f5   :  { %v697_v50 = vmax.f32 %v693_v45, 0.0 }
 0x1f6   :  { %v666_v52 = vsel %vm340_vm6, %v663_v35, %v665_v49  ;;  %v671_v53 = vsel %vm340_vm6, %v665_v49, 0.0 }
 0x1f7   :  { %701 = vst [vmem:[%s1358_s10 + $0x8] sm:$0xff] %v697_v50  ;;  %v682_v55 = vmul.f32 %v666_v52, %v1310_v51  ;;  %v683_v39 = vmul.f32 %v671_v53, %v1315_v62 }
 0x1f9   :  { %v686_v56 = vadd.f32 %v682_v55, %v678_v54  ;;  %v687_v57 = vadd.f32 %v683_v39, %v679_v33 }
 0x1fb   :  { %v694_v58 = vadd.f32 %v902_v27, %v686_v56  ;;  %v695_v59 = vadd.f32 %v902_v27, %v687_v57 }
 0x1fd   :  { %v698_v60 = vmax.f32 %v694_v58, 0.0  ;;  %v699_v61 = vmax.f32 %v695_v59, 0.0 }
 0x1ff   :  { %702 = vst [vmem:[%s1358_s10 + $0x10] sm:$0xff] %v698_v60 }
 0x200   :  { %703 = vst [vmem:[%s1358_s10 + $0x18] sm:$0xff] %v699_v61 }

</bundles_post_ra>
